<compile_context>
chip_gen: v7x
topology: tpu7x:2x2x1
jax: 0.10.0
libtpu: 0.0.40
codegen_flags: <defaults>
</compile_context>

<pallas_src>
import jax
import jax.numpy as jnp
from jax import lax
from jax.experimental import pallas as pl
from jax.experimental.pallas import tpu as pltpu

H_PAD = 128               # lane-dense padded width for hidden / output features
CHUNK = 256               # rows per in-kernel sub-chunk at large batch
MAX_CHUNKS_PER_TILE = 4   # -> batch tile of at most 1024 rows


def _round_up(n, m):
    return ((n + m - 1) // m) * m


def _cdiv(a, b):
    return (a + b - 1) // b


def _make_kernel(in_pad, chunk, n_chunks):
    """Kernel specialized to static (in_pad, chunk, n_chunks)."""

    def kernel(x_ref, w_ref, b_ref, o_ref):
        # x_ref: [tb, in_pad]              bf16
        # w_ref: [in_pad + 2*128, 128]     bf16  (rows 0:in_pad = W1, then W2, then W3)
        # b_ref: [8, 128]                  f32   (row 0 = b1, 1 = b2, 2 = b3, zero-padded)
        # o_ref: [tb, 128]                 bf16  (lane-dense unmasked store)
        w1 = w_ref[0:in_pad, :]
        w2 = w_ref[in_pad:in_pad + H_PAD, :]
        w3 = w_ref[in_pad + H_PAD:in_pad + 2 * H_PAD, :]
        b1 = b_ref[0:1, :]
        b2 = b_ref[1:2, :]
        b3 = b_ref[2:3, :]

        def compute(r):
            x = x_ref[pl.ds(r, chunk), :]
            # Layer 1: Linear + ReLU (bf16 MXU operands, f32 accumulate + epilogue).
            h = jnp.dot(x, w1, preferred_element_type=jnp.float32)
            h = jnp.maximum(h + b1, 0.0)
            # Layer 2: Linear + ReLU.
            h = jnp.dot(h.astype(jnp.bfloat16), w2, preferred_element_type=jnp.float32)
            h = jnp.maximum(h + b2, 0.0)
            # Layer 3: Linear + Identity output activation (stored bf16).
            y = jnp.dot(h.astype(jnp.bfloat16), w3, preferred_element_type=jnp.float32)
            o_ref[pl.ds(r, chunk), :] = (y + b3).astype(o_ref.dtype)

        if n_chunks == 1:
            compute(0)
        else:
            def body(c, carry):
                compute(pl.multiple_of(c * chunk, chunk))
                return carry
            lax.fori_loop(0, n_chunks, body, 0, unroll=True)

    return kernel


def _tiling(batch):
    """Pick (tile rows, in-kernel chunk rows, grid steps, padded batch)."""
    b16 = _round_up(max(batch, 1), 16)        # 16 = bf16 sublane-pair granularity
    if b16 <= 2 * CHUNK:
        min_grid = 2 if b16 >= 32 else 1      # give v7x's 2 TensorCores one tile each
        tb = _round_up(_cdiv(b16, min_grid), 16)
        chunk = tb
        grid = _cdiv(b16, tb)
    else:
        n_chunks_total = _cdiv(b16, CHUNK)
        grid = max(2, _cdiv(n_chunks_total, MAX_CHUNKS_PER_TILE))
        cpt = _cdiv(n_chunks_total, grid)     # chunks per tile, <= 4 (tb <= 1024 rows)
        grid = _cdiv(n_chunks_total, cpt)
        tb = cpt * CHUNK
        chunk = CHUNK
    return tb, chunk, grid, grid * tb


def pack_params(params, in_pad):
    """Pack [(W [in,out] f32, b [out] f32)] * 3 into one bf16 weight slab + one f32 bias slab."""
    assert len(params) == 3
    row_pads = (in_pad, H_PAD, H_PAD)
    w_blocks, b_rows = [], []
    for (w, b), rp in zip(params, row_pads):
        in_d, out_d = w.shape
        assert in_d <= rp and out_d <= H_PAD, "kernel assumes hidden/output dims <= 128"
        w_blocks.append(jnp.pad(w, ((0, rp - in_d), (0, H_PAD - out_d))))
        b_rows.append(jnp.pad(b.reshape(1, -1), ((0, 0), (0, H_PAD - out_d))))
    w_slab = jnp.concatenate(w_blocks, axis=0).astype(jnp.bfloat16)       # [in_pad+256, 128]
    b_slab = jnp.pad(jnp.concatenate(b_rows, axis=0),
                     ((0, 8 - 3), (0, 0))).astype(jnp.float32)            # [8, 128]
    return w_slab, b_slab


def make_mlp(params):
    """Build a jitted forward(x) with the packed parameter slabs cached at init time."""
    assert len(params) == 3, "kernel is specialized to 2 hidden layers + output layer"
    in_dim = params[0][0].shape[0]
    out_dim = params[-1][0].shape[1]
    in_pad = _round_up(in_dim, 16)

    # Hoisted out of the per-call path: packed once, reused by every forward().
    w_slab, b_slab = pack_params(params, in_pad)
    w_slab = jax.device_put(w_slab)
    b_slab = jax.device_put(b_slab)

    @jax.jit
    def forward(x):
        batch = x.shape[0]
        assert x.shape[1] == in_dim
        tb, chunk, grid, b_pad = _tiling(batch)

        # Single fused pad + cast (no zeros + dynamic-update-slice, no extra HBM pass).
        x_pad = jnp.pad(x.astype(jnp.bfloat16),
                        ((0, b_pad - batch), (0, in_pad - in_dim)))

        flops = 2 * b_pad * H_PAD * (in_pad + 2 * H_PAD)
        bytes_accessed = (x_pad.size * 2 + w_slab.size * 2 + b_slab.size * 4
                          + b_pad * H_PAD * 2)

        kernel = _make_kernel(in_pad, chunk, tb // chunk)
        y_pad = pl.pallas_call(
            kernel,
            out_shape=jax.ShapeDtypeStruct((b_pad, H_PAD), jnp.bfloat16),
            grid=(grid,),
            in_specs=[
                pl.BlockSpec((tb, in_pad), lambda i: (i, 0)),                 # x tile per step
                pl.BlockSpec((in_pad + 2 * H_PAD, H_PAD), lambda i: (0, 0)),  # weight slab, resident
                pl.BlockSpec((8, H_PAD), lambda i: (0, 0)),                   # bias slab, resident
            ],
            out_specs=pl.BlockSpec((tb, H_PAD), lambda i: (i, 0)),            # lane-dense bf16 tile
            compiler_params=pltpu.CompilerParams(
                dimension_semantics=("parallel",),      # shard batch over v7x's 2 TCs
                vmem_limit_bytes=32 * 1024 * 1024,      # within v7x 64 MiB physical VMEM
            ),
            cost_estimate=pl.CostEstimate(
                flops=flops, transcendentals=0, bytes_accessed=bytes_accessed),
        )(x_pad, w_slab, b_slab)

        # Strip batch / output-lane padding and cast back to f32 (fuses into the slice).
        return y_pad[:batch, :out_dim].astype(jnp.float32)

    return forward


def init_linear(key, in_dim, out_dim):
    # Matches torch.nn.Linear default init: U(-1/sqrt(in_dim), 1/sqrt(in_dim)).
    # Weight stored as [in, out] (transposed vs torch) so y = x @ W + b.
    kw, kb = jax.random.split(key)
    bound = 1.0 / jnp.sqrt(jnp.float32(in_dim))
    w = jax.random.uniform(kw, (in_dim, out_dim), jnp.float32, -bound, bound)
    b = jax.random.uniform(kb, (out_dim,), jnp.float32, -bound, bound)
    return w, b


def _ref_f32(x, params):
    # Torch-equivalent full-f32 forward (loose tolerance for the bf16 precision contract).
    h = x
    for i, (w, b) in enumerate(params):
        h = h @ w + b
        if i < len(params) - 1:
            h = jnp.maximum(h, 0.0)
    return h


def _ref_bf16(x, params):
    # Same precision contract as the kernel: bf16 MXU operands, f32 accum/epilogue, bf16 store.
    h = x.astype(jnp.bfloat16)
    for i, (w, b) in enumerate(params):
        h = jnp.dot(h, w.astype(jnp.bfloat16), preferred_element_type=jnp.float32) + b
        if i < len(params) - 1:
            h = jnp.maximum(h, 0.0).astype(jnp.bfloat16)
    return h.astype(jnp.bfloat16).astype(jnp.float32)


if __name__ == "__main__":
    # MLP(input_dim=32, output_dim=8, hidden_sizes=(64, 64), activation=nn.ReLU)
    input_dim, output_dim = 32, 8
    hidden_sizes = (64, 64)

    key = jax.random.PRNGKey(0)
    kx, k1, k2, k3 = jax.random.split(key, 4)
    params = [
        init_linear(k1, input_dim, hidden_sizes[0]),
        init_linear(k2, hidden_sizes[0], hidden_sizes[1]),
        init_linear(k3, hidden_sizes[1], output_dim),
    ]
    forward = make_mlp(params)

    # Small batch (module's typical shape), mid batch (2-step parallel grid),
    # and a batch large enough to exercise the in-kernel chunked path.
    for batch in (4, 40, 520):
        x = jax.random.normal(jax.random.fold_in(kx, batch),
                              (batch, input_dim), jnp.float32)
        y = forward(x)
        jax.block_until_ready(y)
        assert y.shape == (batch, output_dim)
        assert jnp.allclose(y, _ref_bf16(x, params), atol=1e-2, rtol=1e-2)
        assert jnp.allclose(y, _ref_f32(x, params), atol=5e-2, rtol=5e-2)

    print("KERNEL_OK")
</pallas_src>

<mosaic_0001>
module attributes {stable_mosaic.version = 11 : i64} {
  func.func @kernel(%arg0: i32, %arg1: memref<16x32xbf16, #tpu.memory_space<vmem>>, %arg2: memref<288x128xbf16, #tpu.memory_space<vmem>>, %arg3: memref<8x128xf32, #tpu.memory_space<vmem>>, %arg4: memref<16x128xbf16, #tpu.memory_space<vmem>>) attributes {dimension_semantics = [#tpu.dimension_semantics<parallel>], iteration_bounds = array<i64: 1>, scalar_prefetch = 0 : i64, scratch_operands = 0 : i64, tpu.core_type = #tpu.core_type<tc>, window_params = [{transform_indices = @transform_0, window_bounds = array<i64: 16, 32>}, {pipeline_mode = #tpu.pipeline_mode<synchronous>, transform_indices = @transform_1, window_bounds = array<i64: 288, 128>}, {pipeline_mode = #tpu.pipeline_mode<synchronous>, transform_indices = @transform_2, window_bounds = array<i64: 8, 128>}, {transform_indices = @transform_3, window_bounds = array<i64: 16, 128>}]} {
    %c0 = arith.constant 0 : index
    %c0_0 = arith.constant 0 : index
    %0 = vector.load %arg2[%c0, %c0_0] : memref<288x128xbf16, #tpu.memory_space<vmem>>, vector<32x128xbf16>
    %c32 = arith.constant 32 : index
    %c0_1 = arith.constant 0 : index
    %1 = vector.load %arg2[%c32, %c0_1] : memref<288x128xbf16, #tpu.memory_space<vmem>>, vector<128x128xbf16>
    %c160 = arith.constant 160 : index
    %c0_2 = arith.constant 0 : index
    %2 = vector.load %arg2[%c160, %c0_2] : memref<288x128xbf16, #tpu.memory_space<vmem>>, vector<128x128xbf16>
    %c0_3 = arith.constant 0 : index
    %c0_4 = arith.constant 0 : index
    %3 = vector.load %arg3[%c0_3, %c0_4] : memref<8x128xf32, #tpu.memory_space<vmem>>, vector<1x128xf32>
    %c1 = arith.constant 1 : index
    %c0_5 = arith.constant 0 : index
    %4 = vector.load %arg3[%c1, %c0_5] : memref<8x128xf32, #tpu.memory_space<vmem>>, vector<1x128xf32>
    %c2 = arith.constant 2 : index
    %c0_6 = arith.constant 0 : index
    %5 = vector.load %arg3[%c2, %c0_6] : memref<8x128xf32, #tpu.memory_space<vmem>>, vector<1x128xf32>
    %c0_7 = arith.constant 0 : index
    %c0_8 = arith.constant 0 : index
    %6 = vector.load %arg1[%c0_7, %c0_8] : memref<16x32xbf16, #tpu.memory_space<vmem>>, vector<16x32xbf16>
    %cst = arith.constant dense<0.000000e+00> : vector<16x128xf32>
    %7 = tpu.matmul %6, %0, %cst {dimension_numbers = #tpu.dot_dimension_numbers<[1], [0], [0], [1], [0, 0, 1, 1], [], []>} : vector<16x32xbf16>, vector<32x128xbf16>, vector<16x128xf32> -> vector<16x128xf32>
    %8 = vector.broadcast %3 : vector<1x128xf32> to vector<16x128xf32>
    %9 = arith.addf %7, %8 : vector<16x128xf32>
    %cst_9 = arith.constant 0.000000e+00 : f32
    %10 = vector.broadcast %cst_9 : f32 to vector<16x128xf32>
    %11 = arith.maximumf %9, %10 : vector<16x128xf32>
    %12 = arith.truncf %11 : vector<16x128xf32> to vector<16x128xbf16>
    %cst_10 = arith.constant dense<0.000000e+00> : vector<16x128xf32>
    %13 = tpu.matmul %12, %1, %cst_10 {dimension_numbers = #tpu.dot_dimension_numbers<[1], [0], [0], [1], [0, 0, 1, 1], [], []>} : vector<16x128xbf16>, vector<128x128xbf16>, vector<16x128xf32> -> vector<16x128xf32>
    %14 = vector.broadcast %4 : vector<1x128xf32> to vector<16x128xf32>
    %15 = arith.addf %13, %14 : vector<16x128xf32>
    %cst_11 = arith.constant 0.000000e+00 : f32
    %16 = vector.broadcast %cst_11 : f32 to vector<16x128xf32>
    %17 = arith.maximumf %15, %16 : vector<16x128xf32>
    %18 = arith.truncf %17 : vector<16x128xf32> to vector<16x128xbf16>
    %cst_12 = arith.constant dense<0.000000e+00> : vector<16x128xf32>
    %19 = tpu.matmul %18, %2, %cst_12 {dimension_numbers = #tpu.dot_dimension_numbers<[1], [0], [0], [1], [0, 0, 1, 1], [], []>} : vector<16x128xbf16>, vector<128x128xbf16>, vector<16x128xf32> -> vector<16x128xf32>
    %20 = vector.broadcast %5 : vector<1x128xf32> to vector<16x128xf32>
    %21 = arith.addf %19, %20 : vector<16x128xf32>
    %22 = arith.truncf %21 : vector<16x128xf32> to vector<16x128xbf16>
    %c0_13 = arith.constant 0 : index
    %c0_14 = arith.constant 0 : index
    %23 = vector.load %arg4[%c0_13, %c0_14] : memref<16x128xbf16, #tpu.memory_space<vmem>>, vector<16x128xbf16>
    tpu.vector_store %arg4[%c0_13, %c0_14], %22 {strides = array<i32>} : memref<16x128xbf16, #tpu.memory_space<vmem>>, vector<16x128xbf16>,
    return
  }
  func.func @transform_0(%arg0: i32) -> (i32, i32) {
    %c0_i32 = arith.constant 0 : i32
    %c0_i32_0 = arith.constant 0 : i32
    return %arg0, %c0_i32 : i32, i32
  }
  func.func @transform_1(%arg0: i32) -> (i32, i32) {
    %c0_i32 = arith.constant 0 : i32
    %c0_i32_0 = arith.constant 0 : i32
    %c0_i32_1 = arith.constant 0 : i32
    return %c0_i32, %c0_i32_0 : i32, i32
  }
  func.func @transform_2(%arg0: i32) -> (i32, i32) {
    %c0_i32 = arith.constant 0 : i32
    %c0_i32_0 = arith.constant 0 : i32
    %c0_i32_1 = arith.constant 0 : i32
    return %c0_i32, %c0_i32_0 : i32, i32
  }
  func.func @transform_3(%arg0: i32) -> (i32, i32) {
    %c0_i32 = arith.constant 0 : i32
    %c0_i32_0 = arith.constant 0 : i32
    return %arg0, %c0_i32 : i32, i32
  }
}

</mosaic_0001>

<bundles_post_ra>
// kernel: forward.1
= control target key start
LH: loop header
LB: loop body
LE: loop exit
PB: predicated region body
PF: predicated region fallthrough
CT: control target
= control target key end

     0   :  { %8 = vsyncpa [#allocation3], 0  ;;  %s492_s12 = smov [#allocation2]   ;;  %s568_s0 = inlined_call_operand.vmem [shape: bf16[16,32], index: 0, kind: input, shape index: {}]   ;;  %s569_s1 = inlined_call_operand.hbm [shape: bf16[288,128], index: 1, kind: input, shape index: {}]   ;;  %s570_s2 = inlined_call_operand.vmem [shape: f32[8,128], index: 2, kind: input, shape index: {}]   ;;  %s571_s3 = inlined_call_operand.vmem [shape: bf16[16,128], index: 3, kind: output, shape index: {}]  }
   0x1   :  { %s16_s13 = sshll.u32 %s492_s12, 4  ;;  %s468_s16 = scalar_lea.hbm %s569_s1, 2304  ;;  %s17_s13 = int_to_ptr.vmem [resolvable:$true] %s16_s13 }
   0x2   :  { %p469_p0 = scmp.ne.s32.totalorder %s569_s1, %s468_s16  ;;  %p472_p1 = scmp.lt.u32.totalorder %s468_s16, %s569_s1 }
   0x4   :  { %p474_p2 = pnand %p472_p1, %p469_p0 }
   0x6   :  { %477 = shalt.err (!%p474_p2)
}
   0x7   :  { %s478_s21 = scalar_lea.vmem %s17_s13, 2304  ;;  %p483_p4 = scmp.lt.s32.totalorder %s17_s13, %s17_s13 }
   0x8   :  { %p479_p3 = scmp.ne.s32.totalorder %s17_s13, %s478_s21  ;;  %p484_p5 = scmp.lt.s32.totalorder %s478_s21, %s478_s21 }
   0xa   :  { %p485_p6 = por %p484_p5, %p483_p4 }
   0xc   :  { %p486_p7 = pnand %p485_p6, %p479_p3 }
   0xe   :  { %489 = shalt.err (!%p486_p7)
}
   0xf   :  { %s493_s22 = smov 64   ;;  %s494_s23 = smov 4  }
  0x10   :  { %22 = dma.hbm_to_vmem [thread:$0]  %s569_s1, 2304, %s17_s13, [#allocation3], %s493_s22, %s493_s22, %s494_s23  }
  0x11   :  { %490 = dma.done.wait [#allocation3], 2304  }
  0x12   :  { %491 = vsyncadd [#allocation3], 4294964992  ;;  %v495_v0 = vmov 0.0   ;;  %vm496_vm0 = vmmov 0   ;;  %v449_v1 = vld [vmem:[#allocation2] sm:$0xff]   ;;  %v450_v2 = vld [vmem:[#allocation2 + $0x8] sm:$0xff]  }
  0x13   :  { %396 = vmatprep.subr.bf16.mxu0 %v495_v0  ;;  %400 = vmatprep.mubr.msk.bf16.mxu0 %vm496_vm0, %v495_v0  ;;  %v452_v3 = vld [vmem:[#allocation2 + $0x10] sm:$0xff]   ;;  %v451_v4 = vld [vmem:[%s568_s0] sm:$0xff]   ;;  %v453_v5 = vld [vmem:[#allocation2 + $0x18] sm:$0xff]   ;;  %vm91_vm1 = vcmask 261120  }
  0x14   :  { %404 = vmatprep.subr.bf16.mxu1 %v495_v0  ;;  %420 = vmatprep.mubr.msk.bf16.mxu1 %vm496_vm0, %v495_v0  ;;  %v454_v6 = vld [vmem:[#allocation2 + $0x20] sm:$0xff]   ;;  %v455_v7 = vld [vmem:[#allocation2 + $0x28] sm:$0xff]   ;;  %v456_v8 = vld [vmem:[#allocation2 + $0x30] sm:$0xff]  }
  0x15   :  { %397 = vmatpush3.bf16.msra.mxu0 %v449_v1  ;;  %405 = vmatpush3.bf16.msra.mxu1 %v452_v3  ;;  %v457_v9 = vld [vmem:[#allocation2 + $0x38] sm:$0xff]   ;;  %v458_v10 = vld [vmem:[#allocation2 + $0x40] sm:$0xff]   ;;  %v459_v11 = vld [vmem:[#allocation2 + $0x48] sm:$0xff]  }
  0x16   :  { %398 = vmatprep.subr.bf16.mxu0 %v495_v0  ;;  %406 = vmatprep.subr.bf16.mxu1 %v495_v0  ;;  %v460_v12 = vld [vmem:[#allocation2 + $0x50] sm:$0xff]   ;;  %v461_v13 = vld [vmem:[#allocation2 + $0x58] sm:$0xff]   ;;  %v462_v14 = vld [vmem:[#allocation2 + $0x60] sm:$0xff]  }
  0x17   :  { %v463_v15 = vld [vmem:[#allocation2 + $0x68] sm:$0xff]   ;;  %v464_v16 = vld [vmem:[#allocation2 + $0x70] sm:$0xff]   ;;  %v465_v17 = vld [vmem:[#allocation2 + $0x78] sm:$0xff]  }
  0x18   :  { %v343_v18 = vld [vmem:[%s570_s2] ss:$0 sm:$0xff]  ;;  %v467_v29 = vld [vmem:[#allocation2 + $0x88] sm:$0xff]   ;;  %v348_v30 = vld [vmem:[%s570_s2 + $0x1] ss:$0 sm:$0xff] }
  0x19   :  { %399 = vmatpush3.bf16.msra.mxu0 %v450_v2  ;;  %407 = vmatpush3.bf16.msra.mxu1 %v453_v5  ;;  %v466_v28 = vld [vmem:[#allocation2 + $0x80] sm:$0xff]  }
  0x1a   :  { %424 = vmatprep.subr.bf16.mxu0 %v495_v0  ;;  %408 = vmatprep.subr.bf16.mxu1 %v495_v0  ;;  %v357_v40 = vld [vmem:[%s570_s2 + $0x2] ss:$0 sm:$0xff] }
  0x1c   :  { %401 = vmatmul.mubr.msk.bf16.vlgmr.msra.gmra.mrb[0].mxu0 %vm91_vm1, %v451_v4 }
  0x1d   :  { %440 = vmatprep.mubr.msk.bf16.mxu0 %vm496_vm0, %v495_v0  ;;  %409 = vmatpush3.bf16.msra.mxu1 %v454_v6 }
  0x1e   :  { %410 = vmatprep.subr.bf16.mxu1 %v495_v0  ;;  %425 = vmatpush3.bf16.msra.mxu0 %v460_v12 }
  0x1f   :  { %426 = vmatprep.subr.bf16.mxu0 %v495_v0 }
  0x21   :  { %411 = vmatpush3.bf16.msra.mxu1 %v455_v7 }
  0x22   :  { %412 = vmatprep.subr.bf16.mxu1 %v495_v0  ;;  %427 = vmatpush3.bf16.msra.mxu0 %v461_v13 }
  0x23   :  { %428 = vmatprep.subr.bf16.mxu0 %v495_v0 }
  0x25   :  { %413 = vmatpush3.bf16.msra.mxu1 %v456_v8 }
  0x26   :  { %414 = vmatprep.subr.bf16.mxu1 %v495_v0  ;;  %429 = vmatpush3.bf16.msra.mxu0 %v462_v14 }
  0x27   :  { %430 = vmatprep.subr.bf16.mxu0 %v495_v0 }
  0x29   :  { %415 = vmatpush3.bf16.msra.mxu1 %v457_v9 }
  0x2a   :  { %416 = vmatprep.subr.bf16.mxu1 %v495_v0  ;;  %431 = vmatpush3.bf16.msra.mxu0 %v463_v15 }
  0x2b   :  { %432 = vmatprep.subr.bf16.mxu0 %v495_v0 }
  0x2d   :  { %417 = vmatpush3.bf16.msra.mxu1 %v458_v10 }
  0x2e   :  { %418 = vmatprep.subr.bf16.mxu1 %v495_v0  ;;  %433 = vmatpush3.bf16.msra.mxu0 %v464_v16 }
  0x2f   :  { %434 = vmatprep.subr.bf16.mxu0 %v495_v0 }
  0x31   :  { %419 = vmatpush3.bf16.msra.mxu1 %v459_v11 }
  0x32   :  { %435 = vmatpush3.bf16.msra.mxu0 %v465_v17 }
  0x33   :  { %436 = vmatprep.subr.bf16.mxu0 %v495_v0 }
  0x36   :  { %437 = vmatpush3.bf16.msra.mxu0 %v466_v28 }
  0x37   :  { %438 = vmatprep.subr.bf16.mxu0 %v495_v0 }
  0x3a   :  { %439 = vmatpush3.bf16.msra.mxu0 %v467_v29 }
  0xef   :  { %v129_v19 = vpop.f32.mrb[0].mxu0 }
  0xf0   :  { %v130_v20 = vadd.f32 %v343_v18, %v129_v19  ;;  %v402_v21 = vpop.f32.mrb[1].mxu0 }
  0xf1   :  { %v132_v22 = vpop.f32.mrb[2].mxu0 }
  0xf2   :  { %v133_v23 = vadd.f32 %v343_v18, %v132_v22  ;;  %v403_v24 = vpop.f32.mrb[3].mxu0  ;;  %v136_v25 = vmax.f32 %v130_v20, 0.0 }
  0xf4   :  { %v137_v26 = vmax.f32 %v133_v23, 0.0 }
  0xf6   :  { %v138_v27 = vpack.c.bf16 %v137_v26, %v136_v25 }
  0xf8   :  { %421 = vmatmul.mubr.bf16.vlgmr.msra.gmra.mrb[0].mxu1 %v138_v27 }
 0x1cb   :  { %v225_v31 = vpop.f32.mrb[0].mxu1 }
 0x1cc   :  { %v226_v32 = vadd.f32 %v348_v30, %v225_v31  ;;  %v422_v33 = vpop.f32.mrb[1].mxu1 }
 0x1cd   :  { %v228_v34 = vpop.f32.mrb[2].mxu1 }
 0x1ce   :  { %v229_v35 = vadd.f32 %v348_v30, %v228_v34  ;;  %v423_v36 = vpop.f32.mrb[3].mxu1  ;;  %v232_v37 = vmax.f32 %v226_v32, 0.0 }
 0x1d0   :  { %v233_v38 = vmax.f32 %v229_v35, 0.0 }
 0x1d2   :  { %v234_v39 = vpack.c.bf16 %v233_v38, %v232_v37 }
 0x1d4   :  { %441 = vmatmul.mubr.bf16.vlgmr.msra.gmra.mrb[4].mxu0 %v234_v39 }
 0x2a7   :  { %v321_v41 = vpop.f32.mrb[4].mxu0 }
 0x2a8   :  { %v442_v42 = vpop.f32.mrb[5].mxu0  ;;  %v322_v44 = vadd.f32 %v357_v40, %v321_v41 }
 0x2a9   :  { %v324_v43 = vpop.f32.mrb[6].mxu0 }
 0x2aa   :  { %v325_v45 = vadd.f32 %v357_v40, %v324_v43  ;;  %v443_v46 = vpop.f32.mrb[7].mxu0 }
 0x2ac   :  { %v373_v47 = vpack.c.bf16 %v325_v45, %v322_v44 }
 0x2ae   :  { %374 = vst [vmem:[%s571_s3] sm:$0xff] %v373_v47  }
 0x2af   :  { %342 = vsyncpa [#allocation3], 1 }

</bundles_post_ra>
